<compile_context>
chip_gen: v7x
topology: tpu7x:2x2x1
jax: 0.10.0
libtpu: 0.0.40
codegen_flags: <defaults>
</compile_context>

<pallas_src>
import jax
import jax.numpy as jnp
from jax.experimental import pallas as pl
from jax.experimental.pallas import tpu as pltpu

# PyTorch module dims
INPUT_DIM = 2
LAYER1 = 2
LAYER2 = 4

LANE = 128            # batch is laid out along lanes inside the kernel
MAX_TILE_B = 65536    # batch elements per grid step; ~8 MiB VMEM double-buffered


def _round_up(n, m):
    return ((n + m - 1) // m) * m


def _mlp_kernel(w1_ref, b1_ref, w2_ref, b2_ref, x_ref, o_ref):
    """Fused 2->2->4 MLP on one (features, TILE_B) block.

    x_ref: (2, TILE_B) VMEM, batch on lanes.
    w*/b* refs: flat f32 arrays in SMEM (scalar broadcasts into VPU FMAs).
    o_ref: (4, TILE_B) VMEM, lane-dense store.
    """
    x0 = x_ref[0:1, :]            # (1, TILE_B)
    x1 = x_ref[1:2, :]            # (1, TILE_B)

    # Layer 1: h_j = relu(w1[0,j]*x0 + w1[1,j]*x1 + b1[j])   (w1 flat: [i*2+j])
    h0 = jnp.maximum(x0 * w1_ref[0] + x1 * w1_ref[2] + b1_ref[0], 0.0)
    h1 = jnp.maximum(x0 * w1_ref[1] + x1 * w1_ref[3] + b1_ref[1], 0.0)

    # Layer 2: y_k = relu(w2[0,k]*h0 + w2[1,k]*h1 + b2[k])   (w2 flat: [j*4+k])
    ys = [
        jnp.maximum(h0 * w2_ref[k] + h1 * w2_ref[LAYER2 + k] + b2_ref[k], 0.0)
        for k in range(LAYER2)
    ]
    o_ref[...] = jnp.concatenate(ys, axis=0)   # (4, TILE_B)


@jax.jit
def block_forward(x, w1, b1, w2, b2):
    """x: (B, 2) f32. w1: (2,2), b1: (2,), w2: (2,4), b2: (4,). Returns (B, 4)."""
    B = x.shape[0]
    tile_b = min(MAX_TILE_B, _round_up(B, LANE))
    Bp = _round_up(B, tile_b)
    num_tiles = Bp // tile_b

    # Batch-on-lanes layout: (features, Bp). Only real data crosses HBM
    # (plus at most one partial tile of zero padding).
    x_t = jnp.zeros((INPUT_DIM, Bp), jnp.float32).at[:, :B].set(x.T)

    out_t = pl.pallas_call(
        _mlp_kernel,
        out_shape=jax.ShapeDtypeStruct((LAYER2, Bp), jnp.float32),
        grid_spec=pltpu.PrefetchScalarGridSpec(
            num_scalar_prefetch=0,
            grid=(num_tiles,),
            in_specs=[
                pl.BlockSpec(memory_space=pltpu.MemorySpace.SMEM),  # w1 flat (4,)
                pl.BlockSpec(memory_space=pltpu.MemorySpace.SMEM),  # b1 (2,)
                pl.BlockSpec(memory_space=pltpu.MemorySpace.SMEM),  # w2 flat (8,)
                pl.BlockSpec(memory_space=pltpu.MemorySpace.SMEM),  # b2 (4,)
                pl.BlockSpec((INPUT_DIM, tile_b), lambda i: (0, i)),  # x tile
            ],
            out_specs=pl.BlockSpec((LAYER2, tile_b), lambda i: (0, i)),
        ),
        compiler_params=pltpu.CompilerParams(
            # Batch tiles are independent -> shard across TensorCores on v7x.
            dimension_semantics=("parallel",),
        ),
    )(w1.reshape(-1), b1, w2.reshape(-1), b2, x_t)

    return out_t[:, :B].T


def _init_params(key):
    """Deterministic init mimicking nn.Linear default (uniform +/- 1/sqrt(fan_in))."""
    k1, k2, k3, k4 = jax.random.split(key, 4)
    bound1 = 1.0 / (INPUT_DIM ** 0.5)
    bound2 = 1.0 / (LAYER1 ** 0.5)
    # Stored as (in_features, out_features) so forward is x @ W + b.
    w1 = jax.random.uniform(k1, (INPUT_DIM, LAYER1), jnp.float32, -bound1, bound1)
    b1 = jax.random.uniform(k2, (LAYER1,), jnp.float32, -bound1, bound1)
    w2 = jax.random.uniform(k3, (LAYER1, LAYER2), jnp.float32, -bound2, bound2)
    b2 = jax.random.uniform(k4, (LAYER2,), jnp.float32, -bound2, bound2)
    return w1, b1, w2, b2


def _reference(x, w1, b1, w2, b2):
    h = jnp.maximum(x @ w1 + b1, 0.0)
    return jnp.maximum(h @ w2 + b2, 0.0)


if __name__ == "__main__":
    key = jax.random.PRNGKey(0)
    kx, kx2, kp = jax.random.split(key, 3)
    w1, b1, w2, b2 = _init_params(kp)

    # Batch a multiple of 128 (exact tiling) and a ragged batch (padding path).
    for bk, batch in ((kx, 256), (kx2, 37)):
        x = jax.random.normal(bk, (batch, INPUT_DIM), jnp.float32)
        out = jax.block_until_ready(block_forward(x, w1, b1, w2, b2))
        ref = _reference(x, w1, b1, w2, b2)
        assert out.shape == (batch, LAYER2)
        assert jnp.allclose(out, ref, atol=1e-5, rtol=1e-5), "mismatch vs reference"

    print("KERNEL_OK")
</pallas_src>

<mosaic_0001>
module attributes {stable_mosaic.version = 11 : i64} {
  func.func @_mlp_kernel(%arg0: i32, %arg1: memref<4xf32, #tpu.memory_space<smem>>, %arg2: memref<2xf32, #tpu.memory_space<smem>>, %arg3: memref<8xf32, #tpu.memory_space<smem>>, %arg4: memref<4xf32, #tpu.memory_space<smem>>, %arg5: memref<2x256xf32, #tpu.memory_space<vmem>>, %arg6: memref<4x256xf32, #tpu.memory_space<vmem>>) attributes {dimension_semantics = [#tpu.dimension_semantics<parallel>], iteration_bounds = array<i64: 1>, scalar_prefetch = 0 : i64, scratch_operands = 0 : i64, tpu.core_type = #tpu.core_type<tc>, window_params = [{transform_indices = @transform_0, window_bounds = array<i64: 4>}, {transform_indices = @transform_1, window_bounds = array<i64: 2>}, {transform_indices = @transform_2, window_bounds = array<i64: 8>}, {transform_indices = @transform_3, window_bounds = array<i64: 4>}, {transform_indices = @transform_4, window_bounds = array<i64: 2, 256>}, {transform_indices = @transform_5, window_bounds = array<i64: 4, 256>}]} {
    %c0 = arith.constant 0 : index
    %c0_0 = arith.constant 0 : index
    %0 = vector.load %arg5[%c0, %c0_0] : memref<2x256xf32, #tpu.memory_space<vmem>>, vector<1x256xf32>
    %c1 = arith.constant 1 : index
    %c0_1 = arith.constant 0 : index
    %1 = vector.load %arg5[%c1, %c0_1] : memref<2x256xf32, #tpu.memory_space<vmem>>, vector<1x256xf32>
    %c0_2 = arith.constant 0 : index
    %2 = memref.load %arg1[%c0_2] : memref<4xf32, #tpu.memory_space<smem>>
    %3 = vector.broadcast %2 : f32 to vector<1x256xf32>
    %4 = arith.mulf %0, %3 : vector<1x256xf32>
    %c2 = arith.constant 2 : index
    %5 = memref.load %arg1[%c2] : memref<4xf32, #tpu.memory_space<smem>>
    %6 = vector.broadcast %5 : f32 to vector<1x256xf32>
    %7 = arith.mulf %1, %6 : vector<1x256xf32>
    %8 = arith.addf %4, %7 : vector<1x256xf32>
    %c0_3 = arith.constant 0 : index
    %9 = memref.load %arg2[%c0_3] : memref<2xf32, #tpu.memory_space<smem>>
    %10 = vector.broadcast %9 : f32 to vector<1x256xf32>
    %11 = arith.addf %8, %10 : vector<1x256xf32>
    %cst = arith.constant 0.000000e+00 : f32
    %12 = vector.broadcast %cst : f32 to vector<1x256xf32>
    %13 = arith.maximumf %11, %12 : vector<1x256xf32>
    %c1_4 = arith.constant 1 : index
    %14 = memref.load %arg1[%c1_4] : memref<4xf32, #tpu.memory_space<smem>>
    %15 = vector.broadcast %14 : f32 to vector<1x256xf32>
    %16 = arith.mulf %0, %15 : vector<1x256xf32>
    %c3 = arith.constant 3 : index
    %17 = memref.load %arg1[%c3] : memref<4xf32, #tpu.memory_space<smem>>
    %18 = vector.broadcast %17 : f32 to vector<1x256xf32>
    %19 = arith.mulf %1, %18 : vector<1x256xf32>
    %20 = arith.addf %16, %19 : vector<1x256xf32>
    %c1_5 = arith.constant 1 : index
    %21 = memref.load %arg2[%c1_5] : memref<2xf32, #tpu.memory_space<smem>>
    %22 = vector.broadcast %21 : f32 to vector<1x256xf32>
    %23 = arith.addf %20, %22 : vector<1x256xf32>
    %cst_6 = arith.constant 0.000000e+00 : f32
    %24 = vector.broadcast %cst_6 : f32 to vector<1x256xf32>
    %25 = arith.maximumf %23, %24 : vector<1x256xf32>
    %c0_7 = arith.constant 0 : index
    %26 = memref.load %arg3[%c0_7] : memref<8xf32, #tpu.memory_space<smem>>
    %27 = vector.broadcast %26 : f32 to vector<1x256xf32>
    %28 = arith.mulf %13, %27 : vector<1x256xf32>
    %c4 = arith.constant 4 : index
    %29 = memref.load %arg3[%c4] : memref<8xf32, #tpu.memory_space<smem>>
    %30 = vector.broadcast %29 : f32 to vector<1x256xf32>
    %31 = arith.mulf %25, %30 : vector<1x256xf32>
    %32 = arith.addf %28, %31 : vector<1x256xf32>
    %c0_8 = arith.constant 0 : index
    %33 = memref.load %arg4[%c0_8] : memref<4xf32, #tpu.memory_space<smem>>
    %34 = vector.broadcast %33 : f32 to vector<1x256xf32>
    %35 = arith.addf %32, %34 : vector<1x256xf32>
    %cst_9 = arith.constant 0.000000e+00 : f32
    %36 = vector.broadcast %cst_9 : f32 to vector<1x256xf32>
    %37 = arith.maximumf %35, %36 : vector<1x256xf32>
    %c1_10 = arith.constant 1 : index
    %38 = memref.load %arg3[%c1_10] : memref<8xf32, #tpu.memory_space<smem>>
    %39 = vector.broadcast %38 : f32 to vector<1x256xf32>
    %40 = arith.mulf %13, %39 : vector<1x256xf32>
    %c5 = arith.constant 5 : index
    %41 = memref.load %arg3[%c5] : memref<8xf32, #tpu.memory_space<smem>>
    %42 = vector.broadcast %41 : f32 to vector<1x256xf32>
    %43 = arith.mulf %25, %42 : vector<1x256xf32>
    %44 = arith.addf %40, %43 : vector<1x256xf32>
    %c1_11 = arith.constant 1 : index
    %45 = memref.load %arg4[%c1_11] : memref<4xf32, #tpu.memory_space<smem>>
    %46 = vector.broadcast %45 : f32 to vector<1x256xf32>
    %47 = arith.addf %44, %46 : vector<1x256xf32>
    %cst_12 = arith.constant 0.000000e+00 : f32
    %48 = vector.broadcast %cst_12 : f32 to vector<1x256xf32>
    %49 = arith.maximumf %47, %48 : vector<1x256xf32>
    %c2_13 = arith.constant 2 : index
    %50 = memref.load %arg3[%c2_13] : memref<8xf32, #tpu.memory_space<smem>>
    %51 = vector.broadcast %50 : f32 to vector<1x256xf32>
    %52 = arith.mulf %13, %51 : vector<1x256xf32>
    %c6 = arith.constant 6 : index
    %53 = memref.load %arg3[%c6] : memref<8xf32, #tpu.memory_space<smem>>
    %54 = vector.broadcast %53 : f32 to vector<1x256xf32>
    %55 = arith.mulf %25, %54 : vector<1x256xf32>
    %56 = arith.addf %52, %55 : vector<1x256xf32>
    %c2_14 = arith.constant 2 : index
    %57 = memref.load %arg4[%c2_14] : memref<4xf32, #tpu.memory_space<smem>>
    %58 = vector.broadcast %57 : f32 to vector<1x256xf32>
    %59 = arith.addf %56, %58 : vector<1x256xf32>
    %cst_15 = arith.constant 0.000000e+00 : f32
    %60 = vector.broadcast %cst_15 : f32 to vector<1x256xf32>
    %61 = arith.maximumf %59, %60 : vector<1x256xf32>
    %c3_16 = arith.constant 3 : index
    %62 = memref.load %arg3[%c3_16] : memref<8xf32, #tpu.memory_space<smem>>
    %63 = vector.broadcast %62 : f32 to vector<1x256xf32>
    %64 = arith.mulf %13, %63 : vector<1x256xf32>
    %c7 = arith.constant 7 : index
    %65 = memref.load %arg3[%c7] : memref<8xf32, #tpu.memory_space<smem>>
    %66 = vector.broadcast %65 : f32 to vector<1x256xf32>
    %67 = arith.mulf %25, %66 : vector<1x256xf32>
    %68 = arith.addf %64, %67 : vector<1x256xf32>
    %c3_17 = arith.constant 3 : index
    %69 = memref.load %arg4[%c3_17] : memref<4xf32, #tpu.memory_space<smem>>
    %70 = vector.broadcast %69 : f32 to vector<1x256xf32>
    %71 = arith.addf %68, %70 : vector<1x256xf32>
    %cst_18 = arith.constant 0.000000e+00 : f32
    %72 = vector.broadcast %cst_18 : f32 to vector<1x256xf32>
    %73 = arith.maximumf %71, %72 : vector<1x256xf32>
    %74 = tpu.concatenate %37, %49, %61, %73 in 0 : vector<1x256xf32>, vector<1x256xf32>, vector<1x256xf32>, vector<1x256xf32> -> vector<4x256xf32>
    %c0_19 = arith.constant 0 : index
    %c0_20 = arith.constant 0 : index
    %75 = vector.load %arg6[%c0_19, %c0_20] : memref<4x256xf32, #tpu.memory_space<vmem>>, vector<4x256xf32>
    tpu.vector_store %arg6[%c0_19, %c0_20], %74 {strides = array<i32>} : memref<4x256xf32, #tpu.memory_space<vmem>>, vector<4x256xf32>,
    return
  }
  func.func @transform_0(%arg0: i32) -> i32 {
    %c0_i32 = arith.constant 0 : i32
    %c0_i32_0 = arith.constant 0 : i32
    return %c0_i32 : i32
  }
  func.func @transform_1(%arg0: i32) -> i32 {
    %c0_i32 = arith.constant 0 : i32
    %c0_i32_0 = arith.constant 0 : i32
    return %c0_i32 : i32
  }
  func.func @transform_2(%arg0: i32) -> i32 {
    %c0_i32 = arith.constant 0 : i32
    %c0_i32_0 = arith.constant 0 : i32
    return %c0_i32 : i32
  }
  func.func @transform_3(%arg0: i32) -> i32 {
    %c0_i32 = arith.constant 0 : i32
    %c0_i32_0 = arith.constant 0 : i32
    return %c0_i32 : i32
  }
  func.func @transform_4(%arg0: i32) -> (i32, i32) {
    %c0_i32 = arith.constant 0 : i32
    %c0_i32_0 = arith.constant 0 : i32
    return %c0_i32, %arg0 : i32, i32
  }
  func.func @transform_5(%arg0: i32) -> (i32, i32) {
    %c0_i32 = arith.constant 0 : i32
    %c0_i32_0 = arith.constant 0 : i32
    return %c0_i32, %arg0 : i32, i32
  }
}

</mosaic_0001>

<bundles_post_ra>
// kernel: block_forward.1
= control target key start
LH: loop header
LB: loop body
LE: loop exit
PB: predicated region body
PF: predicated region fallthrough
CT: control target
= control target key end

     0   :  { %10 = vsyncpa [#allocation4], 0  ;;  %s411_s0 = inlined_call_operand.vmem [shape: f32[4], index: 0, kind: input, shape index: {}]   ;;  %s412_s1 = inlined_call_operand.vmem [shape: f32[2], index: 1, kind: input, shape index: {}]   ;;  %s413_s2 = inlined_call_operand.vmem [shape: f32[8], index: 2, kind: input, shape index: {}]   ;;  %s414_s3 = inlined_call_operand.vmem [shape: f32[4], index: 3, kind: input, shape index: {}]   ;;  %s415_s4 = inlined_call_operand.vmem [shape: f32[2,256], index: 4, kind: input, shape index: {}]   ;;  %s416_s5 = inlined_call_operand.hbm [shape: f32[4,256], index: 5, kind: output, shape index: {}]  }
   0x1   :  { %11 = vsyncpa [#allocation6], 0 }
   0x2   :  { %12 = vsyncpa [#allocation9], 0  ;;  %s30_s20 = sshll.u32 %s412_s1, 4  ;;  %s31_s20 = int_to_ptr.vmem [resolvable:$true] %s30_s20 }
   0x3   :  { %13 = vsyncpa [#allocation3], 0  ;;  %s20_s23 = sshll.u32 %s411_s0, 4  ;;  %s233_s24 = scalar_lea.vmem %s31_s20, 16  ;;  %s21_s23 = int_to_ptr.vmem [resolvable:$true] %s20_s23 }
   0x4   :  { %p234_p0 = scmp.ne.s32.totalorder %s31_s20, %s233_s24  ;;  %p238_p1 = scmp.lt.s32.totalorder %s31_s20, %s31_s20 }
   0x5   :  { %p239_p2 = scmp.lt.s32.totalorder %s233_s24, %s233_s24 }
   0x7   :  { %p240_p3 = por %p239_p2, %p238_p1 }
   0x9   :  { %p241_p4 = pnand %p240_p3, %p234_p0 }
   0xb   :  { %244 = shalt.err (!%p241_p4)
}
   0xc   :  { %s311_s25 = smov [#allocation5]   ;;  %s245_s26 = scalar_lea.vmem %s21_s23, 16 }
   0xd   :  { %33 = dma.vmem_to_smem %s31_s20, 16, %s311_s25, [#allocation6]  }
   0xe   :  { %p246_p5 = scmp.ne.s32.totalorder %s21_s23, %s245_s26  ;;  %p250_p6 = scmp.lt.s32.totalorder %s21_s23, %s21_s23 }
   0xf   :  { %p251_p7 = scmp.lt.s32.totalorder %s245_s26, %s245_s26 }
  0x11   :  { %p252_p8 = por %p251_p7, %p250_p6 }
  0x13   :  { %p253_p9 = pnand %p252_p8, %p246_p5 }
  0x15   :  { %256 = shalt.err (!%p253_p9)
}
  0x16   :  { %s312_s1 = smov [#allocation2]   ;;  %s40_s28 = sshll.u32 %s413_s2, 4  ;;  %s41_s28 = int_to_ptr.vmem [resolvable:$true] %s40_s28 }
  0x17   :  { %23 = dma.vmem_to_smem %s21_s23, 16, %s312_s1, [#allocation4]  }
  0x18   :  { %s50_s6 = sshll.u32 %s414_s3, 4  ;;  %s257_s7 = scalar_lea.vmem %s41_s28, 16  ;;  %s51_s6 = int_to_ptr.vmem [resolvable:$true] %s50_s6 }
  0x19   :  { %p258_p10 = scmp.ne.s32.totalorder %s41_s28, %s257_s7  ;;  %p262_p11 = scmp.lt.s32.totalorder %s41_s28, %s41_s28 }
  0x1a   :  { %p263_p12 = scmp.lt.s32.totalorder %s257_s7, %s257_s7 }
  0x1c   :  { %p264_p13 = por %p263_p12, %p262_p11 }
  0x1e   :  { %p265_p0 = pnand %p264_p13, %p258_p10 }
  0x20   :  { %268 = shalt.err (!%p265_p0)
}
  0x21   :  { %s313_s8 = smov [#allocation7]   ;;  %s269_s9 = scalar_lea.vmem %s51_s6, 16 }
  0x22   :  { %43 = dma.vmem_to_smem %s41_s28, 16, %s313_s8, [#allocation6]  }
  0x23   :  { %p270_p1 = scmp.ne.s32.totalorder %s51_s6, %s269_s9  ;;  %p274_p2 = scmp.lt.s32.totalorder %s51_s6, %s51_s6 }
  0x24   :  { %p275_p3 = scmp.lt.s32.totalorder %s269_s9, %s269_s9 }
  0x26   :  { %p276_p4 = por %p275_p3, %p274_p2 }
  0x28   :  { %p277_p5 = pnand %p276_p4, %p270_p1 }
  0x2a   :  { %280 = shalt.err (!%p277_p5)
}
  0x2b   :  { %s314_s2 = smov [#allocation8]  }
  0x2c   :  { %53 = dma.vmem_to_smem %s51_s6, 16, %s314_s2, [#allocation9]  }
  0x2d   :  { %303 = dma.done.wait [#allocation4], 16  }
  0x2e   :  { %304 = vsyncadd [#allocation4], 4294967280 }
  0x2f   :  { %305 = dma.done.wait [#allocation6], 32  }
  0x30   :  { %306 = vsyncadd [#allocation6], 4294967264 }
  0x31   :  { %307 = dma.done.wait [#allocation9], 16  }
  0x32   :  { %308 = vsyncadd [#allocation9], 4294967280 }
  0x33   :  { %68 = sfence }
  0x34   :  { %s72_s3 = sld [smem:[#allocation2]]  ;;  %s214_s10 = sld [smem:[#allocation2 + $0x2]]  ;;  %v69_v0 = vld [vmem:[%s415_s4] ss:$2 sm:$0x3]  ;;  %v139_v18 = vlaneseq  ;;  %vm182_vm0 = vcmask 1040384  }
  0x35   :  { %s79_s11 = sld [smem:[#allocation5]]  ;;  %s215_s12 = sld [smem:[#allocation2 + $0x1]]  ;;  %v213_v1 = vld [vmem:[%s415_s4 + $0x1] ss:$2 sm:$0x3]  ;;  %vm185_vm1 = vcmask 1041408  }
  0x36   :  { %s216_s13 = sld [smem:[#allocation2 + $0x3]]  ;;  %s358_s14 = sld [smem:[#allocation5 + $0x1]]  ;;  %v140_v31 = vshrl.u32 %v139_v18, 7  ;;  %vm188_vm2 = vcmask 1042432  }
  0x37   :  { %s366_s19 = sld [smem:[#allocation7]]  ;;  %s368_s20 = sld [smem:[#allocation7 + $0x1]] }
  0x38   :  { %s370_s21 = sld [smem:[#allocation7 + $0x4]]  ;;  %s372_s22 = sld [smem:[#allocation7 + $0x5]]  ;;  %v141_v44 = vsub.s32 0, %v140_v31  ;;  %v145_v45 = vsub.s32 1, %v140_v31 }
  0x39   :  { %s374_s23 = sld [smem:[#allocation7 + $0x2]]  ;;  %s376_s24 = sld [smem:[#allocation7 + $0x6]] }
  0x3a   :  { %v73_v2 = vstv %s72_s3  ;;  %v76_v3 = vstv %s214_s10  ;;  %s225_s4 = sld [smem:[#allocation7 + $0x3]]  ;;  %s226_s25 = sld [smem:[#allocation7 + $0x7]] }
  0x3b   :  { %v74_v4 = vmul.f32 %v73_v2, %v69_v0  ;;  %v77_v5 = vmul.f32 %v213_v1, %v76_v3  ;;  %v84_v6 = vstv %s215_s12  ;;  %v80_v7 = vstv %s79_s11  ;;  %s378_s26 = sld [smem:[#allocation8]]  ;;  %s380_s1 = sld [smem:[#allocation8 + $0x1]] }
  0x3c   :  { %v85_v8 = vmul.f32 %v84_v6, %v69_v0  ;;  %v87_v9 = vstv %s216_s13  ;;  %v91_v12 = vstv %s358_s14  ;;  %s383_s0 = sld [smem:[#allocation8 + $0x2]]  ;;  %s385_s27 = sld [smem:[#allocation8 + $0x3]] }
  0x3d   :  { %v78_v10 = vadd.f32 %v77_v5, %v74_v4  ;;  %v88_v11 = vmul.f32 %v213_v1, %v87_v9  ;;  %v95_v15 = vstv %s366_s19  ;;  %v106_v16 = vstv %s368_s20  ;;  %s315_s28 = smov [#allocation10]  }
  0x3e   :  { %v98_v22 = vstv %s370_s21  ;;  %v109_v23 = vstv %s372_s22  ;;  %s202_s29 = sshll.u32 %s315_s28, 4  ;;  %s203_s29 = int_to_ptr.vmem [resolvable:$true] %s202_s29 }
  0x3f   :  { %v81_v13 = vadd.f32 %v80_v7, %v78_v10  ;;  %v89_v14 = vadd.f32 %v88_v11, %v85_v8  ;;  %v117_v17 = vstv %s374_s23  ;;  %v120_v24 = vstv %s376_s24  ;;  %s281_s30 = scalar_lea.vmem %s203_s29, 128  ;;  %p286_p7 = scmp.lt.s32.totalorder %s203_s29, %s203_s29 }
  0x40   :  { %v128_v21 = vstv %s225_s4  ;;  %v131_v25 = vstv %s226_s25  ;;  %p282_p6 = scmp.ne.s32.totalorder %s203_s29, %s281_s30  ;;  %p287_p8 = scmp.lt.s32.totalorder %s281_s30, %s281_s30 }
  0x41   :  { %v82_v19 = vmax.f32 %v81_v13, 0.0  ;;  %v92_v20 = vadd.f32 %v91_v12, %v89_v14  ;;  %v102_v36 = vstv %s378_s26  ;;  %v113_v37 = vstv %s380_s1 }
  0x42   :  { %v124_v38 = vstv %s383_s0  ;;  %v135_v39 = vstv %s385_s27  ;;  %p288_p9 = por %p287_p8, %p286_p7 }
  0x43   :  { %v93_v26 = vmax.f32 %v92_v20, 0.0  ;;  %v96_v27 = vmul.f32 %v95_v15, %v82_v19  ;;  %v107_v28 = vmul.f32 %v106_v16, %v82_v19  ;;  %v118_v29 = vmul.f32 %v117_v17, %v82_v19 }
  0x44   :  { %v129_v30 = vmul.f32 %v128_v21, %v82_v19  ;;  %p289_p10 = pnand %p288_p9, %p282_p6 }
  0x45   :  { %v99_v32 = vmul.f32 %v98_v22, %v93_v26  ;;  %v110_v33 = vmul.f32 %v109_v23, %v93_v26  ;;  %v121_v34 = vmul.f32 %v120_v24, %v93_v26  ;;  %v132_v35 = vmul.f32 %v131_v25, %v93_v26 }
  0x47   :  { %v100_v40 = vadd.f32 %v99_v32, %v96_v27  ;;  %v111_v41 = vadd.f32 %v110_v33, %v107_v28  ;;  %v122_v42 = vadd.f32 %v121_v34, %v118_v29  ;;  %v133_v43 = vadd.f32 %v132_v35, %v129_v30 }
  0x49   :  { %v103_v46 = vadd.f32 %v102_v36, %v100_v40  ;;  %v114_v47 = vadd.f32 %v113_v37, %v111_v41  ;;  %v125_v48 = vadd.f32 %v124_v38, %v122_v42  ;;  %v136_v49 = vadd.f32 %v135_v39, %v133_v43 }
  0x4b   :  { %v104_v50 = vmax.f32 %v103_v46, 0.0  ;;  %v115_v51 = vmax.f32 %v114_v47, 0.0  ;;  %v126_v52 = vmax.f32 %v125_v48, 0.0  ;;  %v137_v53 = vmax.f32 %v136_v49, 0.0 }
  0x4d   :  { %v142_v54 = vrot.slane %v104_v50, %v141_v44  ;;  %v146_v55 = vrot.slane %v104_v50, %v145_v45  ;;  %v153_v56 = vrot.slane %v115_v51, %v141_v44  ;;  %v157_v57 = vrot.slane %v115_v51, %v145_v45 }
  0x4e   :  { %v164_v58 = vrot.slane %v126_v52, %v141_v44  ;;  %v168_v59 = vrot.slane %v126_v52, %v145_v45  ;;  %v175_v60 = vrot.slane %v137_v53, %v141_v44  ;;  %v179_v61 = vrot.slane %v137_v53, %v145_v45 }
  0x4f   :  { %v183_v62 = vsel %vm182_vm0, %v142_v54, %v153_v56  ;;  %v184_v63 = vsel %vm182_vm0, %v146_v55, %v157_v57 }
  0x50   :  { %v186_v0 = vsel %vm185_vm1, %v183_v62, %v164_v58  ;;  %v187_v1 = vsel %vm185_vm1, %v184_v63, %v168_v59 }
  0x51   :  { %v189_v2 = vsel %vm188_vm2, %v186_v0, %v175_v60  ;;  %v190_v3 = vsel %vm188_vm2, %v187_v1, %v179_v61 }
  0x52   :  { %v193_v4 = vcombine.low %v189_v2, %v190_v3 }
  0x54   :  { %195 = vst [vmem:[#allocation10] sm:$0xff] %v193_v4 }
  0x55   :  { %292 = shalt.err (!%p289_p10)
}
  0x56   :  { %s293_s8 = scalar_lea.hbm %s416_s5, 128 }
  0x57   :  { %p294_p11 = scmp.ne.s32.totalorder %s416_s5, %s293_s8  ;;  %p297_p12 = scmp.lt.u32.totalorder %s293_s8, %s416_s5 }
  0x59   :  { %p299_p13 = pnand %p297_p12, %p294_p11 }
  0x5b   :  { %302 = shalt.err (!%p299_p13)
}
  0x5c   :  { %205 = dma.vmem_to_hbm [thread:$0]  %s203_s29, 128, %s416_s5, [#allocation3]  }
  0x5d   :  { %309 = dma.done.wait [#allocation3], 128  }
  0x5e   :  { %310 = vsyncadd [#allocation3], 4294967168 }
  0x5f   :  { %209 = vsyncpa [#allocation3], 1 }
  0x60   :  { %210 = vsyncpa [#allocation4], 1 }
  0x61   :  { %211 = vsyncpa [#allocation6], 1 }
  0x62   :  { %212 = vsyncpa [#allocation9], 1 }

</bundles_post_ra>
